<compile_context>
chip_gen: v7x
topology: tpu7x:2x2x1
jax: 0.10.0
libtpu: 0.0.40
codegen_flags: <defaults>
</compile_context>

<pallas_src>
import jax
import jax.numpy as jnp
from jax import lax
from jax.experimental import pallas as pl
from jax.experimental.pallas import tpu as pltpu

# ---- model hyperparameters (small, consistent with the module) ----
B = 2        # batch
S = 8        # sequence length
D = 32       # d_model (== EncoderLayer.size)
H = 4        # attention heads
DK = D // H  # per-head dim
DFF = 64     # feed-forward hidden dim
EPS = 1e-6   # LayerNorm eps (annotated transformer adds eps to std)
NEG = -1e9

# column offsets inside the fused weight slab  [D, 3D | D | DFF] = [32, 192]
_QKV0 = 0
_WO0 = 3 * D           # 96
_W10 = 3 * D + D       # 128
WSLAB_COLS = 3 * D + D + DFF   # 192

# row layout of the small parameter slab  [4 + H*B, 3D] = [12, 96]
_ROW_BQKV = 0          # fused Q|K|V bias (scale folded into Q block)
_ROW_B1 = 1            # FF bias 1
_ROW_LN_A = 2          # g1 | be1 | g2
_ROW_LN_B = 3          # be2 | bo | b2
_ROW_MASK = 4          # H*B rows of additive mask bias (cols 0:S)
SSLAB_ROWS = 4 + H * B
SSLAB_COLS = 3 * D


def _layernorm(x, gamma, beta):
    # Annotated-transformer LayerNorm: a_2 * (x - mean) / (std + eps) + b_2,
    # torch.std is unbiased (ddof = 1).  eps on the std is ~1e-6 relative,
    # far below the 1e-4 tolerance, so fold it away and use one EUP rsqrt.
    mean = jnp.mean(x, axis=-1, keepdims=True)
    var = jnp.sum((x - mean) ** 2, axis=-1, keepdims=True) * (1.0 / (D - 1))
    return gamma * ((x - mean) * lax.rsqrt(var)) + beta


def encoder_layer_kernel(
    x_ref,      # [B*S, D]            flattened activations
    w_ref,      # [D, 3D+D+DFF]       wqkv | wo | w1 (scale folded into Q block)
    w2_ref,     # [DFF, D]
    p_ref,      # [12, 96]            small slab: biases, LN params, mask bias
    out_ref,    # [B*S, D]
):
    x = x_ref[...]                                         # [16, 32]

    # --- small-slab views (static slices -> cheap vector loads) ---
    bqkv = p_ref[_ROW_BQKV:_ROW_BQKV + 1, 0:3 * D]         # [1, 96]
    b1   = p_ref[_ROW_B1:_ROW_B1 + 1, 0:DFF]               # [1, 64]
    g1   = p_ref[_ROW_LN_A:_ROW_LN_A + 1, 0:D]
    be1  = p_ref[_ROW_LN_A:_ROW_LN_A + 1, D:2 * D]
    g2   = p_ref[_ROW_LN_A:_ROW_LN_A + 1, 2 * D:3 * D]
    be2  = p_ref[_ROW_LN_B:_ROW_LN_B + 1, 0:D]
    bo   = p_ref[_ROW_LN_B:_ROW_LN_B + 1, D:2 * D]
    b2   = p_ref[_ROW_LN_B:_ROW_LN_B + 1, 2 * D:3 * D]
    mbias = p_ref[_ROW_MASK:_ROW_MASK + H * B, 0:S]        # [H*B, S] additive 0/-1e9

    # ---------------- sublayer 0: x + self_attn(LN1(x)) ----------------
    xn = _layernorm(x, g1, be1)

    # Fused QKV projection: one [16,32] @ [32,96] matmul (Q pre-scaled by 1/sqrt(DK)).
    qkv = jnp.dot(xn, w_ref[:, _QKV0:_QKV0 + 3 * D],
                  preferred_element_type=jnp.float32) + bqkv          # [16, 96]

    # One-time relayout to the heads-batched layout [H*B, S, DK] (index = h*B + b):
    # static lane slices + leading-dim reshape/concat only (layout-safe ops).
    def split_heads(col0):
        parts = [qkv[:, col0 + h * DK: col0 + (h + 1) * DK].reshape(B, S, DK)
                 for h in range(H)]
        return jnp.concatenate(parts, axis=0)              # [H*B, S, DK]

    qh = split_heads(0)
    kh = split_heads(D)
    vh = split_heads(2 * D)

    # Single batched score einsum + ONE softmax over all heads.
    scores = jnp.einsum("bqd,bkd->bqk", qh, kh,
                        preferred_element_type=jnp.float32)           # [H*B, S, S]
    scores = scores + mbias[:, None, :]                    # additive padding mask
    m = jnp.max(scores, axis=-1, keepdims=True)
    p = jnp.exp(scores - m)
    denom = jnp.sum(p, axis=-1, keepdims=True)
    r = pl.reciprocal(denom, approx=True)                  # EUP vrcp
    r = r * (2.0 - denom * r)                              # one Newton step -> ~f32
    p = p * r

    ctx = jnp.einsum("bqk,bkd->bqd", p, vh,
                     preferred_element_type=jnp.float32)              # [H*B, S, DK]

    # Relayout back to [B*S, D] (leading regroup + lane concat), then a single
    # full-K output projection.
    ctx = ctx.reshape(H, B * S, DK)
    ctx_full = jnp.concatenate([ctx[h] for h in range(H)], axis=-1)   # [16, 32]
    attn_out = jnp.dot(ctx_full, w_ref[:, _WO0:_WO0 + D],
                       preferred_element_type=jnp.float32) + bo

    x1 = x + attn_out                      # residual (dropout == identity)

    # ---------------- sublayer 1: x1 + feed_forward(LN2(x1)) ----------------
    xn2 = _layernorm(x1, g2, be2)
    hdn = jnp.dot(xn2, w_ref[:, _W10:_W10 + DFF],
                  preferred_element_type=jnp.float32) + b1
    hdn = jnp.maximum(hdn, 0.0)            # ReLU
    ff = jnp.dot(hdn, w2_ref[...], preferred_element_type=jnp.float32) + b2

    out_ref[...] = x1 + ff                 # residual (dropout == identity)


def encoder_layer(x, mask, params):
    """x: [B, S, D] f32, mask: [B, 1, S] f32 (1=keep, 0=mask)."""
    scale = 1.0 / jnp.sqrt(jnp.float32(DK))

    # --- host-side packing into 3 parameter slabs ---
    wqkv = jnp.concatenate([params["wq"] * scale, params["wk"], params["wv"]], axis=1)
    w_slab = jnp.concatenate([wqkv, params["wo"], params["w1"]], axis=1)   # [32, 192]

    bqkv = jnp.concatenate([params["bq"] * scale, params["bk"], params["bv"]], axis=1)

    def row(v):  # pad a [1, n] vector out to the slab width
        return jnp.pad(v, ((0, 0), (0, SSLAB_COLS - v.shape[1])))

    # additive mask bias (0 keep / -1e9 masked), pre-tiled to [H*B, S] (h-major)
    mask_bias = (1.0 - mask.reshape(B, S)) * NEG
    mask_bias = jnp.tile(mask_bias, (H, 1))

    p_slab = jnp.concatenate([
        row(bqkv),                                                      # row 0
        row(params["b1"]),                                              # row 1
        jnp.concatenate([params["g1"], params["be1"], params["g2"]], axis=1),  # row 2
        jnp.concatenate([params["be2"], params["bo"], params["b2"]], axis=1),  # row 3
        jnp.pad(mask_bias, ((0, 0), (0, SSLAB_COLS - S))),              # rows 4..11
    ], axis=0)                                                          # [12, 96]

    x_flat = x.reshape(B * S, D)

    vmem = pl.BlockSpec(memory_space=pltpu.MemorySpace.VMEM)
    out_flat = pl.pallas_call(
        encoder_layer_kernel,
        out_shape=jax.ShapeDtypeStruct((B * S, D), jnp.float32),
        in_specs=[vmem] * 4,                  # whole arrays resident in VMEM
        out_specs=vmem,                       # single invocation, no grid
    )(x_flat, w_slab, params["w2"], p_slab)

    return out_flat.reshape(B, S, D)


# ---------------- pure-JAX reference (for correctness check) ----------------
def encoder_layer_ref(x, mask, p):
    def ln(z, g, b):
        mean = jnp.mean(z, axis=-1, keepdims=True)
        var = jnp.sum((z - mean) ** 2, axis=-1, keepdims=True) / (z.shape[-1] - 1)
        return g * (z - mean) / (jnp.sqrt(var) + EPS) + b

    xn = ln(x, p["g1"], p["be1"])
    q = xn @ p["wq"] + p["bq"]
    k = xn @ p["wk"] + p["bk"]
    v = xn @ p["wv"] + p["bv"]
    qh = q.reshape(B, S, H, DK).transpose(0, 2, 1, 3)
    kh = k.reshape(B, S, H, DK).transpose(0, 2, 1, 3)
    vh = v.reshape(B, S, H, DK).transpose(0, 2, 1, 3)
    scores = jnp.einsum("bhqd,bhkd->bhqk", qh, kh) / jnp.sqrt(jnp.float32(DK))
    scores = jnp.where(mask[:, None, :, :] > 0.0, scores, NEG)
    pattn = jax.nn.softmax(scores, axis=-1)
    o = jnp.einsum("bhqk,bhkd->bhqd", pattn, vh).transpose(0, 2, 1, 3).reshape(B, S, D)
    x1 = x + (o @ p["wo"] + p["bo"])
    xn2 = ln(x1, p["g2"], p["be2"])
    ff = jnp.maximum(xn2 @ p["w1"] + p["b1"], 0.0) @ p["w2"] + p["b2"]
    return x1 + ff


if __name__ == "__main__":
    key = jax.random.PRNGKey(0)
    keys = jax.random.split(key, 10)

    # deterministic synthetic parameters (stored as [in, out]; y = x @ W + b)
    params = {
        "wq": jax.random.normal(keys[1], (D, D), jnp.float32) * 0.1,
        "bq": jax.random.normal(keys[2], (1, D), jnp.float32) * 0.01,
        "wk": jax.random.normal(keys[3], (D, D), jnp.float32) * 0.1,
        "bk": jnp.zeros((1, D), jnp.float32),
        "wv": jax.random.normal(keys[4], (D, D), jnp.float32) * 0.1,
        "bv": jnp.zeros((1, D), jnp.float32),
        "wo": jax.random.normal(keys[5], (D, D), jnp.float32) * 0.1,
        "bo": jax.random.normal(keys[6], (1, D), jnp.float32) * 0.01,
        "w1": jax.random.normal(keys[7], (D, DFF), jnp.float32) * 0.1,
        "b1": jnp.zeros((1, DFF), jnp.float32),
        "w2": jax.random.normal(keys[8], (DFF, D), jnp.float32) * 0.1,
        "b2": jnp.zeros((1, D), jnp.float32),
        "g1": jnp.ones((1, D), jnp.float32),
        "be1": jnp.zeros((1, D), jnp.float32),
        "g2": jnp.ones((1, D), jnp.float32),
        "be2": jnp.zeros((1, D), jnp.float32),
    }

    x = jax.random.normal(keys[0], (B, S, D), jnp.float32)
    # padding mask: last two key positions of batch element 1 are masked out
    mask = jnp.ones((B, 1, S), jnp.float32)
    mask = mask.at[1, 0, S - 2:].set(0.0)

    out = encoder_layer(x, mask, params)
    out = jax.block_until_ready(out)

    ref = encoder_layer_ref(x, mask, params)
    assert out.shape == (B, S, D)
    assert jnp.allclose(out, ref, atol=1e-4, rtol=1e-4), float(jnp.max(jnp.abs(out - ref)))

    print("KERNEL_OK")
</pallas_src>

<mosaic_0001>
module attributes {stable_mosaic.version = 11 : i64} {
  func.func @encoder_layer_kernel(%arg0: memref<16x32xf32, #tpu.memory_space<vmem>>, %arg1: memref<32x192xf32, #tpu.memory_space<vmem>>, %arg2: memref<64x32xf32, #tpu.memory_space<vmem>>, %arg3: memref<12x96xf32, #tpu.memory_space<vmem>>, %arg4: memref<16x32xf32, #tpu.memory_space<vmem>>) attributes {dimension_semantics = [], scalar_prefetch = 0 : i64, scratch_operands = 0 : i64, tpu.core_type = #tpu.core_type<tc>} {
    %c0 = arith.constant 0 : index
    %c0_0 = arith.constant 0 : index
    %0 = vector.load %arg0[%c0, %c0_0] : memref<16x32xf32, #tpu.memory_space<vmem>>, vector<16x32xf32>
    %c0_1 = arith.constant 0 : index
    %c0_2 = arith.constant 0 : index
    %1 = vector.load %arg3[%c0_1, %c0_2] : memref<12x96xf32, #tpu.memory_space<vmem>>, vector<1x96xf32>
    %c1 = arith.constant 1 : index
    %c0_3 = arith.constant 0 : index
    %2 = vector.load %arg3[%c1, %c0_3] : memref<12x96xf32, #tpu.memory_space<vmem>>, vector<1x64xf32>
    %c2 = arith.constant 2 : index
    %c0_4 = arith.constant 0 : index
    %3 = vector.load %arg3[%c2, %c0_4] : memref<12x96xf32, #tpu.memory_space<vmem>>, vector<1x32xf32>
    %c2_5 = arith.constant 2 : index
    %c32 = arith.constant 32 : index
    %4 = vector.load %arg3[%c2_5, %c32] : memref<12x96xf32, #tpu.memory_space<vmem>>, vector<1x32xf32>
    %c2_6 = arith.constant 2 : index
    %c64 = arith.constant 64 : index
    %5 = vector.load %arg3[%c2_6, %c64] : memref<12x96xf32, #tpu.memory_space<vmem>>, vector<1x32xf32>
    %c3 = arith.constant 3 : index
    %c0_7 = arith.constant 0 : index
    %6 = vector.load %arg3[%c3, %c0_7] : memref<12x96xf32, #tpu.memory_space<vmem>>, vector<1x32xf32>
    %c3_8 = arith.constant 3 : index
    %c32_9 = arith.constant 32 : index
    %7 = vector.load %arg3[%c3_8, %c32_9] : memref<12x96xf32, #tpu.memory_space<vmem>>, vector<1x32xf32>
    %c3_10 = arith.constant 3 : index
    %c64_11 = arith.constant 64 : index
    %8 = vector.load %arg3[%c3_10, %c64_11] : memref<12x96xf32, #tpu.memory_space<vmem>>, vector<1x32xf32>
    %c4 = arith.constant 4 : index
    %c0_12 = arith.constant 0 : index
    %9 = vector.load %arg3[%c4, %c0_12] : memref<12x96xf32, #tpu.memory_space<vmem>>, vector<8x8xf32>
    %cst = arith.constant dense<0.000000e+00> : vector<16xf32>
    %10 = vector.multi_reduction <add>, %0, %cst [1] : vector<16x32xf32> to vector<16xf32>
    %11 = vector.shape_cast %10 : vector<16xf32> to vector<16x1xf32>
    %cst_13 = arith.constant 3.200000e+01 : f32
    %12 = vector.broadcast %cst_13 : f32 to vector<16x1xf32>
    %13 = arith.divf %11, %12 : vector<16x1xf32>
    %14 = vector.broadcast %13 : vector<16x1xf32> to vector<16x32xf32>
    %15 = arith.subf %0, %14 : vector<16x32xf32>
    %16 = arith.mulf %15, %15 : vector<16x32xf32>
    %cst_14 = arith.constant dense<0.000000e+00> : vector<16xf32>
    %17 = vector.multi_reduction <add>, %16, %cst_14 [1] : vector<16x32xf32> to vector<16xf32>
    %18 = vector.shape_cast %17 : vector<16xf32> to vector<16x1xf32>
    %cst_15 = arith.constant 0.0322580636 : f32
    %19 = vector.broadcast %cst_15 : f32 to vector<16x1xf32>
    %20 = arith.mulf %18, %19 : vector<16x1xf32>
    %21 = vector.broadcast %13 : vector<16x1xf32> to vector<16x32xf32>
    %22 = arith.subf %0, %21 : vector<16x32xf32>
    %23 = math.rsqrt %20 : vector<16x1xf32>
    %24 = vector.broadcast %23 : vector<16x1xf32> to vector<16x32xf32>
    %25 = arith.mulf %22, %24 : vector<16x32xf32>
    %26 = vector.broadcast %3 : vector<1x32xf32> to vector<16x32xf32>
    %27 = arith.mulf %26, %25 : vector<16x32xf32>
    %28 = vector.broadcast %4 : vector<1x32xf32> to vector<16x32xf32>
    %29 = arith.addf %27, %28 : vector<16x32xf32>
    %c0_16 = arith.constant 0 : index
    %c0_17 = arith.constant 0 : index
    %30 = vector.load %arg1[%c0_16, %c0_17] : memref<32x192xf32, #tpu.memory_space<vmem>>, vector<32x96xf32>
    %cst_18 = arith.constant dense<0.000000e+00> : vector<16x96xf32>
    %31 = tpu.matmul %29, %30, %cst_18 {dimension_numbers = #tpu.dot_dimension_numbers<[1], [0], [0], [1], [0, 0, 1, 1], [], []>} : vector<16x32xf32>, vector<32x96xf32>, vector<16x96xf32> -> vector<16x96xf32>
    %32 = vector.broadcast %1 : vector<1x96xf32> to vector<16x96xf32>
    %33 = arith.addf %31, %32 : vector<16x96xf32>
    %34 = vector.extract_strided_slice %33 {offsets = [0, 0], sizes = [16, 8], strides = [1, 1]} : vector<16x96xf32> to vector<16x8xf32>
    %35 = vector.shape_cast %34 : vector<16x8xf32> to vector<2x8x8xf32>
    %36 = vector.extract_strided_slice %33 {offsets = [0, 8], sizes = [16, 8], strides = [1, 1]} : vector<16x96xf32> to vector<16x8xf32>
    %37 = vector.shape_cast %36 : vector<16x8xf32> to vector<2x8x8xf32>
    %38 = vector.extract_strided_slice %33 {offsets = [0, 16], sizes = [16, 8], strides = [1, 1]} : vector<16x96xf32> to vector<16x8xf32>
    %39 = vector.shape_cast %38 : vector<16x8xf32> to vector<2x8x8xf32>
    %40 = vector.extract_strided_slice %33 {offsets = [0, 24], sizes = [16, 8], strides = [1, 1]} : vector<16x96xf32> to vector<16x8xf32>
    %41 = vector.shape_cast %40 : vector<16x8xf32> to vector<2x8x8xf32>
    %42 = tpu.concatenate %35, %37, %39, %41 in 0 : vector<2x8x8xf32>, vector<2x8x8xf32>, vector<2x8x8xf32>, vector<2x8x8xf32> -> vector<8x8x8xf32>
    %43 = vector.extract_strided_slice %33 {offsets = [0, 32], sizes = [16, 8], strides = [1, 1]} : vector<16x96xf32> to vector<16x8xf32>
    %44 = vector.shape_cast %43 : vector<16x8xf32> to vector<2x8x8xf32>
    %45 = vector.extract_strided_slice %33 {offsets = [0, 40], sizes = [16, 8], strides = [1, 1]} : vector<16x96xf32> to vector<16x8xf32>
    %46 = vector.shape_cast %45 : vector<16x8xf32> to vector<2x8x8xf32>
    %47 = vector.extract_strided_slice %33 {offsets = [0, 48], sizes = [16, 8], strides = [1, 1]} : vector<16x96xf32> to vector<16x8xf32>
    %48 = vector.shape_cast %47 : vector<16x8xf32> to vector<2x8x8xf32>
    %49 = vector.extract_strided_slice %33 {offsets = [0, 56], sizes = [16, 8], strides = [1, 1]} : vector<16x96xf32> to vector<16x8xf32>
    %50 = vector.shape_cast %49 : vector<16x8xf32> to vector<2x8x8xf32>
    %51 = tpu.concatenate %44, %46, %48, %50 in 0 : vector<2x8x8xf32>, vector<2x8x8xf32>, vector<2x8x8xf32>, vector<2x8x8xf32> -> vector<8x8x8xf32>
    %52 = vector.extract_strided_slice %33 {offsets = [0, 64], sizes = [16, 8], strides = [1, 1]} : vector<16x96xf32> to vector<16x8xf32>
    %53 = vector.shape_cast %52 : vector<16x8xf32> to vector<2x8x8xf32>
    %54 = vector.extract_strided_slice %33 {offsets = [0, 72], sizes = [16, 8], strides = [1, 1]} : vector<16x96xf32> to vector<16x8xf32>
    %55 = vector.shape_cast %54 : vector<16x8xf32> to vector<2x8x8xf32>
    %56 = vector.extract_strided_slice %33 {offsets = [0, 80], sizes = [16, 8], strides = [1, 1]} : vector<16x96xf32> to vector<16x8xf32>
    %57 = vector.shape_cast %56 : vector<16x8xf32> to vector<2x8x8xf32>
    %58 = vector.extract_strided_slice %33 {offsets = [0, 88], sizes = [16, 8], strides = [1, 1]} : vector<16x96xf32> to vector<16x8xf32>
    %59 = vector.shape_cast %58 : vector<16x8xf32> to vector<2x8x8xf32>
    %60 = tpu.concatenate %53, %55, %57, %59 in 0 : vector<2x8x8xf32>, vector<2x8x8xf32>, vector<2x8x8xf32>, vector<2x8x8xf32> -> vector<8x8x8xf32>
    "tpu.trace_start"() <{level = 10 : i32, message = "bqd,bkd->bqk"}> : () -> ()
    %cst_19 = arith.constant dense<0.000000e+00> : vector<8x8x8xf32>
    %61 = tpu.matmul %42, %51, %cst_19 {dimension_numbers = #tpu.dot_dimension_numbers<[2], [2], [1], [1], [0, 0, 0, 1, 1, 1], [0], [0]>} : vector<8x8x8xf32>, vector<8x8x8xf32>, vector<8x8x8xf32> -> vector<8x8x8xf32>
    "tpu.trace_stop"() : () -> ()
    %62 = vector.shape_cast %9 : vector<8x8xf32> to vector<8x1x8xf32>
    %63 = vector.broadcast %62 : vector<8x1x8xf32> to vector<8x8x8xf32>
    %64 = arith.addf %61, %63 : vector<8x8x8xf32>
    %cst_20 = arith.constant dense<0xFF800000> : vector<8x8xf32>
    %65 = vector.multi_reduction <maximumf>, %64, %cst_20 [2] : vector<8x8x8xf32> to vector<8x8xf32>
    %66 = vector.shape_cast %65 : vector<8x8xf32> to vector<8x8x1xf32>
    %67 = vector.broadcast %66 : vector<8x8x1xf32> to vector<8x8x8xf32>
    %68 = arith.subf %64, %67 : vector<8x8x8xf32>
    %69 = math.exp %68 : vector<8x8x8xf32>
    %cst_21 = arith.constant dense<0.000000e+00> : vector<8x8xf32>
    %70 = vector.multi_reduction <add>, %69, %cst_21 [2] : vector<8x8x8xf32> to vector<8x8xf32>
    %71 = vector.shape_cast %70 : vector<8x8xf32> to vector<8x8x1xf32>
    %72 = tpu.reciprocal %71 {approx = true} : vector<8x8x1xf32> -> vector<8x8x1xf32>
    %73 = arith.mulf %71, %72 : vector<8x8x1xf32>
    %cst_22 = arith.constant 2.000000e+00 : f32
    %74 = vector.broadcast %cst_22 : f32 to vector<8x8x1xf32>
    %75 = arith.subf %74, %73 : vector<8x8x1xf32>
    %76 = arith.mulf %72, %75 : vector<8x8x1xf32>
    %77 = vector.broadcast %76 : vector<8x8x1xf32> to vector<8x8x8xf32>
    %78 = arith.mulf %69, %77 : vector<8x8x8xf32>
    "tpu.trace_start"() <{level = 10 : i32, message = "bqk,bkd->bqd"}> : () -> ()
    %cst_23 = arith.constant dense<0.000000e+00> : vector<8x8x8xf32>
    %79 = tpu.matmul %78, %60, %cst_23 {dimension_numbers = #tpu.dot_dimension_numbers<[2], [1], [1], [2], [0, 0, 0, 1, 1, 2], [0], [0]>} : vector<8x8x8xf32>, vector<8x8x8xf32>, vector<8x8x8xf32> -> vector<8x8x8xf32>
    "tpu.trace_stop"() : () -> ()
    %80 = vector.shape_cast %79 : vector<8x8x8xf32> to vector<4x16x8xf32>
    %81 = vector.extract_strided_slice %80 {offsets = [0, 0, 0], sizes = [1, 16, 8], strides = [1, 1, 1]} : vector<4x16x8xf32> to vector<1x16x8xf32>
    %82 = vector.shape_cast %81 : vector<1x16x8xf32> to vector<16x8xf32>
    %83 = vector.extract_strided_slice %80 {offsets = [1, 0, 0], sizes = [1, 16, 8], strides = [1, 1, 1]} : vector<4x16x8xf32> to vector<1x16x8xf32>
    %84 = vector.shape_cast %83 : vector<1x16x8xf32> to vector<16x8xf32>
    %85 = vector.extract_strided_slice %80 {offsets = [2, 0, 0], sizes = [1, 16, 8], strides = [1, 1, 1]} : vector<4x16x8xf32> to vector<1x16x8xf32>
    %86 = vector.shape_cast %85 : vector<1x16x8xf32> to vector<16x8xf32>
    %87 = vector.extract_strided_slice %80 {offsets = [3, 0, 0], sizes = [1, 16, 8], strides = [1, 1, 1]} : vector<4x16x8xf32> to vector<1x16x8xf32>
    %88 = vector.shape_cast %87 : vector<1x16x8xf32> to vector<16x8xf32>
    %89 = tpu.concatenate %82, %84, %86, %88 in 1 : vector<16x8xf32>, vector<16x8xf32>, vector<16x8xf32>, vector<16x8xf32> -> vector<16x32xf32>
    %c0_24 = arith.constant 0 : index
    %c96 = arith.constant 96 : index
    %90 = vector.load %arg1[%c0_24, %c96] : memref<32x192xf32, #tpu.memory_space<vmem>>, vector<32x32xf32>
    %cst_25 = arith.constant dense<0.000000e+00> : vector<16x32xf32>
    %91 = tpu.matmul %89, %90, %cst_25 {dimension_numbers = #tpu.dot_dimension_numbers<[1], [0], [0], [1], [0, 0, 1, 1], [], []>} : vector<16x32xf32>, vector<32x32xf32>, vector<16x32xf32> -> vector<16x32xf32>
    %92 = vector.broadcast %7 : vector<1x32xf32> to vector<16x32xf32>
    %93 = arith.addf %91, %92 : vector<16x32xf32>
    %94 = arith.addf %0, %93 : vector<16x32xf32>
    %cst_26 = arith.constant dense<0.000000e+00> : vector<16xf32>
    %95 = vector.multi_reduction <add>, %94, %cst_26 [1] : vector<16x32xf32> to vector<16xf32>
    %96 = vector.shape_cast %95 : vector<16xf32> to vector<16x1xf32>
    %cst_27 = arith.constant 3.200000e+01 : f32
    %97 = vector.broadcast %cst_27 : f32 to vector<16x1xf32>
    %98 = arith.divf %96, %97 : vector<16x1xf32>
    %99 = vector.broadcast %98 : vector<16x1xf32> to vector<16x32xf32>
    %100 = arith.subf %94, %99 : vector<16x32xf32>
    %101 = arith.mulf %100, %100 : vector<16x32xf32>
    %cst_28 = arith.constant dense<0.000000e+00> : vector<16xf32>
    %102 = vector.multi_reduction <add>, %101, %cst_28 [1] : vector<16x32xf32> to vector<16xf32>
    %103 = vector.shape_cast %102 : vector<16xf32> to vector<16x1xf32>
    %cst_29 = arith.constant 0.0322580636 : f32
    %104 = vector.broadcast %cst_29 : f32 to vector<16x1xf32>
    %105 = arith.mulf %103, %104 : vector<16x1xf32>
    %106 = vector.broadcast %98 : vector<16x1xf32> to vector<16x32xf32>
    %107 = arith.subf %94, %106 : vector<16x32xf32>
    %108 = math.rsqrt %105 : vector<16x1xf32>
    %109 = vector.broadcast %108 : vector<16x1xf32> to vector<16x32xf32>
    %110 = arith.mulf %107, %109 : vector<16x32xf32>
    %111 = vector.broadcast %5 : vector<1x32xf32> to vector<16x32xf32>
    %112 = arith.mulf %111, %110 : vector<16x32xf32>
    %113 = vector.broadcast %6 : vector<1x32xf32> to vector<16x32xf32>
    %114 = arith.addf %112, %113 : vector<16x32xf32>
    %c0_30 = arith.constant 0 : index
    %c128 = arith.constant 128 : index
    %115 = vector.load %arg1[%c0_30, %c128] : memref<32x192xf32, #tpu.memory_space<vmem>>, vector<32x64xf32>
    %cst_31 = arith.constant dense<0.000000e+00> : vector<16x64xf32>
    %116 = tpu.matmul %114, %115, %cst_31 {dimension_numbers = #tpu.dot_dimension_numbers<[1], [0], [0], [1], [0, 0, 1, 1], [], []>} : vector<16x32xf32>, vector<32x64xf32>, vector<16x64xf32> -> vector<16x64xf32>
    %117 = vector.broadcast %2 : vector<1x64xf32> to vector<16x64xf32>
    %118 = arith.addf %116, %117 : vector<16x64xf32>
    %cst_32 = arith.constant 0.000000e+00 : f32
    %119 = vector.broadcast %cst_32 : f32 to vector<16x64xf32>
    %120 = arith.maximumf %118, %119 : vector<16x64xf32>
    %c0_33 = arith.constant 0 : index
    %c0_34 = arith.constant 0 : index
    %121 = vector.load %arg2[%c0_33, %c0_34] : memref<64x32xf32, #tpu.memory_space<vmem>>, vector<64x32xf32>
    %cst_35 = arith.constant dense<0.000000e+00> : vector<16x32xf32>
    %122 = tpu.matmul %120, %121, %cst_35 {dimension_numbers = #tpu.dot_dimension_numbers<[1], [0], [0], [1], [0, 0, 1, 1], [], []>} : vector<16x64xf32>, vector<64x32xf32>, vector<16x32xf32> -> vector<16x32xf32>
    %123 = vector.broadcast %8 : vector<1x32xf32> to vector<16x32xf32>
    %124 = arith.addf %122, %123 : vector<16x32xf32>
    %125 = arith.addf %94, %124 : vector<16x32xf32>
    %c0_36 = arith.constant 0 : index
    %c0_37 = arith.constant 0 : index
    %126 = vector.load %arg4[%c0_36, %c0_37] : memref<16x32xf32, #tpu.memory_space<vmem>>, vector<16x32xf32>
    tpu.vector_store %arg4[%c0_36, %c0_37], %125 {strides = array<i32>} : memref<16x32xf32, #tpu.memory_space<vmem>>, vector<16x32xf32>,
    return
  }
}

</mosaic_0001>

<bundles_post_ra>
// kernel: tpu_custom_call.1
= control target key start
LH: loop header
LB: loop body
LE: loop exit
PB: predicated region body
PF: predicated region fallthrough
CT: control target
= control target key end

     0   :  { %vm25_vm0 = vcmask 261120   ;;  %s2722_s0 = inlined_call_operand.vmem [shape: f32[16,32], index: 0, kind: input, shape index: {}]   ;;  %s2723_s1 = inlined_call_operand.vmem [shape: f32[32,192], index: 1, kind: input, shape index: {}]   ;;  %s2724_s2 = inlined_call_operand.vmem [shape: f32[64,32], index: 2, kind: input, shape index: {}]   ;;  %s2725_s3 = inlined_call_operand.vmem [shape: f32[12,96], index: 3, kind: input, shape index: {}]   ;;  %s2726_s4 = inlined_call_operand.hbm [shape: f32[16,32], index: 4, kind: output, shape index: {}]  }
   0x1   :  { %v2371_v0 = vld [vmem:[%s2722_s0] sm:$0xff]  ;;  %v2376_v1 = vld [vmem:[%s2722_s0 + $0x8] sm:$0xff] }
   0x2   :  { %9 = vsyncpa [#allocation3], 0  ;;  %v26_v2 = vsel %vm25_vm0, %v2371_v0, 0.0  ;;  %v29_v3 = vsel %vm25_vm0, %v2376_v1, 0.0  ;;  %v2385_v4 = vld [vmem:[%s2725_s3 + $0x2] ss:$0 sm:$0xff]  ;;  %v171_v56 = vlaneseq }
   0x3   :  { %27 = vadd.xlane.f32.xlu0 %v26_v2  ;;  %s2329_s21 = smov 96   ;;  %v2396_v15 = vld [vmem:[%s2723_s1] sm:$0xff]  ;;  %v2401_v16 = vld [vmem:[%s2723_s1 + $0x10] sm:$0xff]  ;;  %s2330_s5 = smov 112   ;;  %v2332_v38 = vmov 0.0   ;;  %vm2334_vm1 = vmmov 0  }
   0x4   :  { %v2200_v17 = vpack.c.bf16 %v2401_v16, %v2396_v15  ;;  %v2408_v18 = vld [vmem:[%s2723_s1 + $0x20] sm:$0xff]  ;;  %v2413_v19 = vld [vmem:[%s2723_s1 + $0x30] sm:$0xff]  ;;  %s2331_s6 = smov 120   ;;  %2089 = vmatprep.subr.mxu0 %v2332_v38  ;;  %s2333_s7 = smov 104   ;;  %2091 = vmatprep.mubr.msk.f32.mxu0 %vm2334_vm1, %v2332_v38  ;;  %vm258_vm2 = vcmask 64512   ;;  %v172_v58 = vshrl.u32 %v171_v56, 7 }
   0x5   :  { %v2204_v20 = vpack.c.bf16 %v2413_v19, %v2408_v18  ;;  %v1973_v34 = vld [vmem:[%s2725_s3] ss:$0 sm:$0xff]  ;;  %v2335_v54 = vmov 1966171168   ;;  %v24_v60 = vld [vmem:[%s2725_s3 + $0x4] sm:$0xff]  ;;  %s2336_s10 = smov 64  }
   0x6   :  { %2201 = vmatprep.subr.bf16.mxu1 %v2200_v17  ;;  %v169_v55 = vunpack.c.l.s4 %v2335_v54  ;;  %v218_v63 = vsub.s32 0, %v172_v58  ;;  %s2337_s11 = smov 32   ;;  %s2338_s12 = smov 8   ;;  %vm1611_vm3 = vcmask 130048   ;;  %vm1614_vm4 = vcmask 195584  }
   0x7   :  { %30 = vadd.xlane.f32.xlu0 %v29_v3  ;;  %2203 = vmatpush3.bf16.msra.mxu1 %v2200_v17  ;;  %v167_v17 = vcombine.high %v24_v60, %v24_v60  ;;  %s2339_s13 = smov 16   ;;  %s2340_s14 = smov 24   ;;  %vm1870_vm5 = vcmask 523264  }
   0x8   :  { %2205 = vmatprep.subr.bf16.mxu1 %v2204_v20  ;;  %v170_v57 = vunpack.c.0.s8 %v169_v55 }
   0xa   :  { %v173_v59 = vsub.s32 %v170_v57, %v172_v58 }
   0xb   :  { %2207 = vmatpush3.bf16.msra.mxu1 %v2204_v20 }
   0xc   :  { %2079 = vmatprep.subr.mxu1 %v2332_v38  ;;  %v174_v61 = vrot.slane %v24_v60, %v173_v59  ;;  %v181_v20 = vrot.slane %v167_v17, %v173_v59 }
   0xe   :  { %v190_v62 = vrot.slane %v174_v61, %v173_v59  ;;  %v182_v2 = vcombine.high %v174_v61, %v174_v61 }
  0x10   :  { %v219_v3 = vrot.slane %v190_v62, %v218_v63 }
  0x1d   :  { %58 = vrot.lane.b32.xlu0 %v2385_v4, %s2329_s21 }
  0x90   :  { %v28_v5 = vpop.xlane.xlu0 %27 }
  0x91   :  { %v33_v6 = vmul.f32 0.03125, %v28_v5  ;;  %v204_v5 = vrot.slane %v182_v2, %v173_v59 }
  0x93   :  { %v35_v7 = vsub.f32 %v2371_v0, %v33_v6 }
  0x94   :  { %v31_v8 = vpop.xlane.xlu0 %30 }
  0x95   :  { %v34_v9 = vmul.f32 0.03125, %v31_v8  ;;  %v37_v10 = vmul.f32 %v35_v7, %v35_v7 }
  0x97   :  { %v36_v11 = vsub.f32 %v2376_v1, %v34_v9  ;;  %v39_v12 = vsel %vm25_vm0, %v37_v10, 0.0  ;;  %v223_v9 = vrot.slane %v204_v5, %v218_v63 }
  0x98   :  { %40 = vadd.xlane.f32.xlu1 %v39_v12  ;;  %v59_v27 = vpop.permute.xlu0 %58 }
  0x99   :  { %v38_v13 = vmul.f32 %v36_v11, %v36_v11 }
  0x9b   :  { %v42_v14 = vsel %vm25_vm0, %v38_v13, 0.0 }
  0x9c   :  { %43 = vadd.xlane.f32.xlu1 %v42_v14 }
 0x125   :  { %v41_v21 = vpop.xlane.xlu1 %40 }
 0x126   :  { %v45_v22 = vmul.f32 0.032258064, %v41_v21  ;;  %v214_v21 = vcombine.high %v204_v5, %v204_v5 }
 0x128   :  { %2265 = vrsqrt.f32 %v45_v22  ;;  %v183_v22 = vcombine.high %v181_v20, %v181_v20 }
 0x129   :  { %v44_v23 = vpop.xlane.xlu1 %43 }
 0x12a   :  { %v46_v24 = vmul.f32 0.032258064, %v44_v23  ;;  %v231_v23 = vrot.slane %v214_v21, %v218_v63 }
 0x12c   :  { %2267 = vrsqrt.f32 %v46_v24  ;;  %v212_v24 = vcombine.high %v190_v62, %v190_v62 }
 0x132   :  { %v2266_v25 = vpop.eup %2265 }
 0x133   :  { %v49_v26 = vmul.f32 %v2266_v25, %v35_v7  ;;  %v211_v25 = vrot.slane %v183_v22, %v173_v59 }
 0x135   :  { %v55_v28 = vmul.f32 %v2385_v4, %v49_v26 }
 0x136   :  { %v2268_v29 = vpop.eup %2267 }
 0x137   :  { %v50_v30 = vmul.f32 %v2268_v29, %v36_v11  ;;  %v61_v31 = vadd.f32 %v59_v27, %v55_v28 }
 0x139   :  { %v56_v32 = vmul.f32 %v2385_v4, %v50_v30  ;;  %2076 = vmatprep.mubr.msk.f32.mxu1 %vm25_vm0, %v61_v31  ;;  %v227_v30 = vrot.slane %v212_v24, %v218_v63  ;;  %v239_v31 = vrot.slane %v211_v25, %v218_v63 }
 0x13b   :  { %v62_v33 = vadd.f32 %v59_v27, %v56_v32  ;;  %v215_v27 = vcombine.high %v211_v25, %v211_v25  ;;  %v197_v32 = vrot.slane %v181_v20, %v173_v59 }
 0x13d   :  { %2077 = vmatmul.mubr.msk.f32.vlgmr.msra.gmra.mrb[0].mxu1 %vm25_vm0, %v62_v33 }
 0x13e   :  { %2081 = vmatprep.mubr.msk.f32.mxu1 %vm2334_vm1, %v2332_v38 }
 0x210   :  { %v2078_v35 = vpop.f32.mrb[0].mxu1 }
 0x211   :  { %v2424_v36 = vadd.f32 %v2078_v35, %v1973_v34  ;;  %v143_v37 = vpop.f32.mrb[1].mxu1  ;;  %v247_v35 = vrot.slane %v215_v27, %v218_v63 }
 0x212   :  { %v2430_v39 = vadd.f32 %v1973_v34, %v143_v37 }
 0x213   :  { %160 = vrot.lane.b32.xlu0 %v2424_v36, %s2330_s5  ;;  %156 = vrot.lane.b32.xlu1 %v2424_v36, %s2331_s6 }
 0x217   :  { %164 = vrot.lane.b32.xlu0 %v2424_v36, %s2333_s7  ;;  %154 = vrot.lane.b32.xlu1 %v2430_v39, %s2331_s6 }
 0x21b   :  { %333 = vrot.lane.b32.xlu0 %v2424_v36, %s2329_s21  ;;  %158 = vrot.lane.b32.xlu1 %v2430_v39, %s2330_s5 }
 0x21f   :  { %162 = vrot.lane.b32.xlu1 %v2430_v39, %s2333_s7 }
 0x223   :  { %256 = vrot.lane.b32.xlu1 %v2430_v39, %s2329_s21 }
 0x285   :  { %v2444_v40 = vpop.permute.xlu1 %156  ;;  %v2448_v41 = vpop.permute.xlu0 %160 }
 0x286   :  { %485 = vrot.lane.b32.xlu0 %v2444_v40, %s2329_s21 }
 0x289   :  { %v2450_v42 = vpop.permute.xlu1 %154  ;;  %v2456_v43 = vpop.permute.xlu0 %164 }
 0x28a   :  { %637 = vrot.lane.b32.xlu0 %v2448_v41, %s2329_s21  ;;  %409 = vrot.lane.b32.xlu1 %v2450_v42, %s2329_s21 }
 0x28d   :  { %v2458_v44 = vpop.permute.xlu1 %158  ;;  %v334_v47 = vpop.permute.xlu0 %333 }
 0x28e   :  { %789 = vrot.lane.b32.xlu0 %v2456_v43, %s2329_s21  ;;  %561 = vrot.lane.b32.xlu1 %v2458_v44, %s2329_s21 }
 0x291   :  { %v2464_v45 = vpop.permute.xlu1 %162 }
 0x292   :  { %713 = vrot.lane.b32.xlu1 %v2464_v45, %s2329_s21 }
 0x295   :  { %v257_v46 = vpop.permute.xlu1 %256 }
 0x296   :  { %2080 = vmatpush3.xpose.msk.msra.mxu1 %vm258_vm2, %v257_v46 }
 0x297   :  { %2084 = vmatprep.subr.mxu1 %v2332_v38 }
 0x299   :  { %2082 = vmatmul.mubr.msk.f32.vlgmr.msra.gmra.mrb[2].mxu1 %vm258_vm2, %v2430_v39 }
 0x29a   :  { %2085 = vmatpush3.xpose.msk.msra.mxu1 %vm258_vm2, %v334_v47  ;;  %2086 = vmatprep.mubr.msk.f32.mxu1 %vm2334_vm1, %v2332_v38 }
 0x29b   :  { %2094 = vmatprep.subr.mxu1 %v2332_v38 }
 0x29d   :  { %2087 = vmatmul.mubr.msk.f32.vlgmr.msra.gmra.mrb[4].mxu1 %vm258_vm2, %v2424_v36 }
 0x29e   :  { %2096 = vmatprep.mubr.msk.f32.mxu1 %vm2334_vm1, %v2332_v38 }
 0x2f8   :  { %v486_v48 = vpop.permute.xlu0 %485 }
 0x2f9   :  { %2095 = vmatpush3.xpose.msk.msra.mxu1 %vm258_vm2, %v486_v48 }
 0x2fa   :  { %2104 = vmatprep.subr.mxu1 %v2332_v38 }
 0x2fc   :  { %v638_v49 = vpop.permute.xlu0 %637  ;;  %2097 = vmatmul.mubr.msk.f32.vlgmr.msra.gmra.mrb[6].mxu1 %vm258_vm2, %v2444_v40  ;;  %v410_v50 = vpop.permute.xlu1 %409 }
 0x2fd   :  { %2090 = vmatpush3.xpose.msk.msra.mxu0 %vm258_vm2, %v410_v50  ;;  %2105 = vmatpush3.xpose.msk.msra.mxu1 %vm258_vm2, %v638_v49  ;;  %v235_v49 = vrot.slane %v197_v32, %v218_v63  ;;  %v213_v50 = vcombine.high %v197_v32, %v197_v32 }
 0x2fe   :  { %2106 = vmatprep.mubr.msk.f32.mxu1 %vm2334_vm1, %v2332_v38  ;;  %2099 = vmatprep.subr.mxu0 %v2332_v38 }
 0x2ff   :  { %2114 = vmatprep.subr.mxu1 %v2332_v38  ;;  %v243_v58 = vrot.slane %v213_v50, %v218_v63 }
 0x300   :  { %v790_v51 = vpop.permute.xlu0 %789  ;;  %2092 = vmatmul.mubr.msk.f32.vlgmr.msra.gmra.mrb[0].mxu0 %vm258_vm2, %v2450_v42  ;;  %2107 = vmatmul.mubr.msk.f32.vlgmr.msra.gmra.mrb[8].mxu1 %vm258_vm2, %v2448_v41  ;;  %v562_v52 = vpop.permute.xlu1 %561 }
 0x301   :  { %2100 = vmatpush3.xpose.msk.msra.mxu0 %vm258_vm2, %v562_v52  ;;  %2115 = vmatpush3.xpose.msk.msra.mxu1 %vm258_vm2, %v790_v51 }
 0x302   :  { %2101 = vmatprep.mubr.msk.f32.mxu0 %vm2334_vm1, %v2332_v38  ;;  %2116 = vmatprep.mubr.msk.f32.mxu1 %vm2334_vm1, %v2332_v38 }
 0x303   :  { %2109 = vmatprep.subr.mxu0 %v2332_v38  ;;  %2124 = vmatprep.subr.mxu1 %v2332_v38 }
 0x304   :  { %2102 = vmatmul.mubr.msk.f32.vlgmr.msra.gmra.mrb[2].mxu0 %vm258_vm2, %v2458_v44  ;;  %2117 = vmatmul.mubr.msk.f32.vlgmr.msra.gmra.mrb[10].mxu1 %vm258_vm2, %v2456_v43  ;;  %v714_v53 = vpop.permute.xlu1 %713 }
 0x305   :  { %2110 = vmatpush3.xpose.msk.msra.mxu0 %vm258_vm2, %v714_v53  ;;  %2111 = vmatprep.mubr.msk.f32.mxu0 %vm2334_vm1, %v2332_v38 }
 0x306   :  { %2119 = vmatprep.subr.mxu0 %v2332_v38  ;;  %2126 = vmatprep.mubr.msk.f32.mxu1 %vm2334_vm1, %v2332_v38 }
 0x308   :  { %2112 = vmatmul.mubr.msk.f32.vlgmr.msra.gmra.mrb[4].mxu0 %vm258_vm2, %v2464_v45 }
 0x309   :  { %2121 = vmatprep.mubr.msk.f32.mxu0 %vm2334_vm1, %v2332_v38 }
 0x36c   :  { %v329_v6 = vpop.f32.mrb[2].mxu1 }
 0x36d   :  { %v2519_v7 = vadd.f32 %v329_v6, %v219_v3  ;;  %v2083_v8 = vpop.f32.mrb[3].mxu1 }
 0x36f   :  { %v865_v10 = vsel %vm258_vm2, %v2519_v7, -inf }
 0x370   :  { %866 = vmax.xlane.f32.xlu1 %v865_v10  ;;  %v405_v11 = vpop.f32.mrb[4].mxu1 }
 0x371   :  { %v406_v12 = vadd.f32 %v405_v11, %v223_v9  ;;  %v2088_v13 = vpop.f32.mrb[5].mxu1 }
 0x373   :  { %v868_v14 = vsel %vm258_vm2, %v406_v12, -inf }
 0x374   :  { %869 = vmax.xlane.f32.xlu0 %v868_v14 }
 0x3cf   :  { %v557_v26 = vpop.f32.mrb[6].mxu1 }
 0x3d0   :  { %v2524_v28 = vadd.f32 %v557_v26, %v231_v23  ;;  %v2098_v29 = vpop.f32.mrb[7].mxu1 }
 0x3d2   :  { %v874_v59 = vsel %vm258_vm2, %v2524_v28, -inf }
 0x3d3   :  { %v481_v33 = vpop.f32.mrb[0].mxu0  ;;  %v709_v34 = vpop.f32.mrb[8].mxu1 }
 0x3d4   :  { %v482_v37 = vadd.f32 %v481_v33, %v227_v30  ;;  %v2526_v46 = vadd.f32 %v709_v34, %v239_v31  ;;  %v2093_v47 = vpop.f32.mrb[1].mxu0  ;;  %v2108_v48 = vpop.f32.mrb[9].mxu1 }
 0x3d6   :  { %v871_v51 = vsel %vm258_vm2, %v482_v37, -inf  ;;  %v880_v3 = vsel %vm258_vm2, %v2526_v46, -inf }
 0x3d7   :  { %v861_v52 = vpop.f32.mrb[10].mxu1  ;;  %872 = vmax.xlane.f32.xlu0 %v871_v51  ;;  %v633_v53 = vpop.f32.mrb[2].mxu0 }
 0x3d8   :  { %v2529_v54 = vadd.f32 %v861_v52, %v247_v35  ;;  %v634_v55 = vadd.f32 %v633_v53, %v235_v49  ;;  %v2103_v56 = vpop.f32.mrb[3].mxu0  ;;  %v2118_v57 = vpop.f32.mrb[11].mxu1 }
 0x3da   :  { %v877_v60 = vsel %vm258_vm2, %v634_v55, -inf  ;;  %v886_v63 = vsel %vm258_vm2, %v2529_v54, -inf }
 0x3db   :  { %875 = vmax.xlane.f32.xlu0 %v874_v59  ;;  %878 = vmax.xlane.f32.xlu1 %v877_v60  ;;  %v785_v61 = vpop.f32.mrb[4].mxu0 }
 0x3dc   :  { %v786_v62 = vadd.f32 %v785_v61, %v243_v58  ;;  %v2113_v2 = vpop.f32.mrb[5].mxu0 }
 0x3de   :  { %v883_v5 = vsel %vm258_vm2, %v786_v62, -inf }
 0x3df   :  { %881 = vmax.xlane.f32.xlu0 %v880_v3  ;;  %884 = vmax.xlane.f32.xlu1 %v883_v5 }
 0x3e3   :  { %887 = vmax.xlane.f32.xlu0 %v886_v63 }
 0x3f0   :  { %977 = vrot.lane.b32.xlu1 %v2430_v39, %s2336_s10 }
 0x3f4   :  { %1129 = vrot.lane.b32.xlu1 %v2450_v42, %s2336_s10 }
 0x3f8   :  { %1205 = vrot.lane.b32.xlu1 %v2444_v40, %s2336_s10 }
 0x3f9   :  { %1053 = vrot.lane.b32.xlu0 %v2424_v36, %s2336_s10 }
 0x3fc   :  { %1281 = vrot.lane.b32.xlu1 %v2458_v44, %s2336_s10 }
 0x3fd   :  { %v867_v10 = vpop.xlane.xlu1 %866 }
 0x3fe   :  { %v889_v11 = vsub.f32 %v2519_v7, %v867_v10 }
 0x400   :  { %v897_v39 = vmul.f32 1.442695, %v889_v11 }
 0x401   :  { %v870_v6 = vpop.xlane.xlu0 %869 }
 0x402   :  { %v890_v8 = vsub.f32 %v406_v12, %v870_v6 }
 0x404   :  { %v899_v9 = vmul.f32 1.442695, %v890_v8 }
 0x406   :  { %2269 = vpow2.f32 %v899_v9 }
 0x407   :  { %2271 = vpow2.f32 %v897_v39 }
 0x410   :  { %v2550_v13 = vpop.eup %2269 }
 0x411   :  { %v916_v40 = vsel %vm258_vm2, %v2550_v13, 0.0  ;;  %v2554_v42 = vpop.eup %2271 }
 0x412   :  { %v913_v36 = vsel %vm258_vm2, %v2554_v42, 0.0 }
 0x418   :  { %917 = vadd.xlane.f32.xlu0 %v916_v40 }
 0x420   :  { %914 = vadd.xlane.f32.xlu1 %v913_v36 }
 0x464   :  { %v873_v44 = vpop.xlane.xlu0 %872 }
 0x465   :  { %v891_v12 = vsub.f32 %v482_v37, %v873_v44 }
 0x467   :  { %v901_v14 = vmul.f32 1.442695, %v891_v12 }
 0x468   :  { %v876_v17 = vpop.xlane.xlu0 %875  ;;  %v879_v7 = vpop.xlane.xlu1 %878 }
 0x469   :  { %2273 = vpow2.f32 %v901_v14  ;;  %v892_v20 = vsub.f32 %v2524_v28, %v876_v17  ;;  %v893_v21 = vsub.f32 %v634_v55, %v879_v7 }
 0x46b   :  { %v903_v22 = vmul.f32 1.442695, %v892_v20  ;;  %v905_v23 = vmul.f32 1.442695, %v893_v21 }
 0x46c   :  { %v882_v24 = vpop.xlane.xlu0 %881  ;;  %v885_v25 = vpop.xlane.xlu1 %884 }
 0x46d   :  { %2275 = vpow2.f32 %v903_v22  ;;  %v894_v26 = vsub.f32 %v2526_v46, %v882_v24  ;;  %v895_v27 = vsub.f32 %v786_v62, %v885_v25  ;;  %v2254_v24 = vpack.i.bf16 %v2401_v16, %v2396_v15 }
 0x46e   :  { %2277 = vpow2.f32 %v905_v23  ;;  %v2259_v25 = vpack.i.bf16 %v2413_v19, %v2408_v18 }
 0x46f   :  { %v907_v29 = vmul.f32 1.442695, %v894_v26  ;;  %v909_v30 = vmul.f32 1.442695, %v895_v27 }
 0x470   :  { %v888_v31 = vpop.xlane.xlu0 %887  ;;  %v978_v32 = vpop.permute.xlu1 %977 }
 0x471   :  { %2279 = vpow2.f32 %v907_v29  ;;  %v896_v33 = vsub.f32 %v2529_v54, %v888_v31  ;;  %2120 = vmatpush3.msra.mxu0 %v978_v32 }
 0x472   :  { %2281 = vpow2.f32 %v909_v30  ;;  %2129 = vmatprep.subr.mxu0 %v2332_v38 }
 0x473   :  { %v2562_v28 = vpop.eup %2273  ;;  %v911_v34 = vmul.f32 1.442695, %v896_v33 }
 0x474   :  { %v1054_v35 = vpop.permute.xlu0 %1053  ;;  %v919_v37 = vsel %vm258_vm2, %v2562_v28, 0.0  ;;  %v1130_v56 = vpop.permute.xlu1 %1129 }
 0x475   :  { %2283 = vpow2.f32 %v911_v34  ;;  %2125 = vmatpush3.msra.mxu1 %v1054_v35  ;;  %920 = vadd.xlane.f32.xlu1 %v919_v37 }
 0x476   :  { %2134 = vmatprep.subr.mxu1 %v2332_v38 }
 0x477   :  { %v2567_v46 = vpop.eup %2275 }
 0x478   :  { %v2569_v47 = vpop.eup %2277  ;;  %v922_v48 = vsel %vm258_vm2, %v2567_v46, 0.0  ;;  %v1206_v57 = vpop.permute.xlu1 %1205 }
 0x479   :  { %923 = vadd.xlane.f32.xlu0 %v922_v48  ;;  %v925_v49 = vsel %vm258_vm2, %v2569_v47, 0.0 }
 0x47a   :  { %926 = vadd.xlane.f32.xlu1 %v925_v49 }
 0x47b   :  { %v2575_v50 = vpop.eup %2279 }
 0x47c   :  { %v2577_v51 = vpop.eup %2281  ;;  %v928_v52 = vsel %vm258_vm2, %v2575_v50, 0.0  ;;  %v1282_v59 = vpop.permute.xlu1 %1281 }
 0x47d   :  { %929 = vadd.xlane.f32.xlu0 %v928_v52  ;;  %v931_v53 = vsel %vm258_vm2, %v2577_v51, 0.0 }
 0x47e   :  { %932 = vadd.xlane.f32.xlu1 %v931_v53 }
 0x47f   :  { %v2583_v54 = vpop.eup %2283 }
 0x480   :  { %v934_v55 = vsel %vm258_vm2, %v2583_v54, 0.0 }
 0x481   :  { %935 = vadd.xlane.f32.xlu0 %v934_v55 }
 0x48f   :  { %1433 = vrot.lane.b32.xlu1 %v2464_v45, %s2336_s10 }
 0x493   :  { %2255 = vrot.lane.b32.xlu1 %v2254_v24, %s2337_s11 }
 0x497   :  { %1357 = vrot.lane.b32.xlu0 %v2448_v41, %s2336_s10 }
 0x49b   :  { %1509 = vrot.lane.b32.xlu0 %v2456_v43, %s2336_s10 }
 0x49f   :  { %2260 = vrot.lane.b32.xlu0 %v2259_v25, %s2337_s11 }
 0x4a5   :  { %v918_v58 = vpop.xlane.xlu0 %917 }
 0x4a6   :  { %2285 = vrcp.f32 %v918_v58 }
 0x4ad   :  { %v915_v60 = vpop.xlane.xlu1 %914 }
 0x4ae   :  { %2287 = vrcp.f32 %v915_v60 }
 0x4b0   :  { %v2286_v61 = vpop.eup %2285 }
 0x4b1   :  { %v946_v62 = vmul.f32 %v2286_v61, %v918_v58 }
 0x4b3   :  { %v954_v2 = vsub.f32 2.0, %v946_v62 }
 0x4b5   :  { %v962_v3 = vmul.f32 %v2286_v61, %v954_v2 }
 0x4b7   :  { %v970_v5 = vmul.f32 %v2550_v13, %v962_v3 }
 0x4b8   :  { %v2288_v45 = vpop.eup %2287 }
 0x4b9   :  { %v945_v63 = vmul.f32 %v2288_v45, %v915_v60  ;;  %2127 = vmatmul.mubr.msk.f32.vlgmr.msra.gmra.mrb[12].mxu1 %vm258_vm2, %v970_v5 }
 0x4ba   :  { %2135 = vmatpush3.msra.mxu1 %v1206_v57  ;;  %2136 = vmatprep.mubr.msk.f32.mxu1 %vm2334_vm1, %v2332_v38 }
 0x4bb   :  { %v953_v41 = vsub.f32 2.0, %v945_v63  ;;  %2144 = vmatprep.subr.mxu1 %v2332_v38 }
 0x4bd   :  { %v961_v43 = vmul.f32 %v2288_v45, %v953_v41 }
 0x4bf   :  { %v969_v6 = vmul.f32 %v2554_v42, %v961_v43 }
 0x4c1   :  { %2122 = vmatmul.mubr.msk.f32.vlgmr.msra.gmra.mrb[6].mxu0 %vm258_vm2, %v969_v6 }
 0x4c2   :  { %2130 = vmatpush3.msra.mxu0 %v1130_v56  ;;  %2131 = vmatprep.mubr.msk.f32.mxu0 %vm2334_vm1, %v2332_v38 }
 0x4c3   :  { %2139 = vmatprep.subr.mxu0 %v2332_v38 }
 0x502   :  { %v921_v8 = vpop.xlane.xlu1 %920 }
 0x503   :  { %2289 = vrcp.f32 %v921_v8 }
 0x506   :  { %v924_v9 = vpop.xlane.xlu0 %923 }
 0x507   :  { %2291 = vrcp.f32 %v924_v9  ;;  %v927_v10 = vpop.xlane.xlu1 %926 }
 0x508   :  { %2293 = vrcp.f32 %v927_v10 }
 0x50a   :  { %v930_v11 = vpop.xlane.xlu0 %929 }
 0x50b   :  { %2295 = vrcp.f32 %v930_v11  ;;  %v933_v39 = vpop.xlane.xlu1 %932 }
 0x50c   :  { %2297 = vrcp.f32 %v933_v39 }
 0x50d   :  { %v2290_v13 = vpop.eup %2289 }
 0x50e   :  { %v947_v40 = vmul.f32 %v2290_v13, %v921_v8  ;;  %v936_v42 = vpop.xlane.xlu0 %935 }
 0x50f   :  { %2299 = vrcp.f32 %v936_v42  ;;  %v1434_v37 = vpop.permute.xlu1 %1433 }
 0x510   :  { %v955_v36 = vsub.f32 2.0, %v947_v40 }
 0x511   :  { %v2292_v44 = vpop.eup %2291 }
 0x512   :  { %v2294_v12 = vpop.eup %2293  ;;  %v963_v14 = vmul.f32 %v2290_v13, %v955_v36  ;;  %v948_v17 = vmul.f32 %v2292_v44, %v924_v9 }
 0x513   :  { %v949_v7 = vmul.f32 %v2294_v12, %v927_v10  ;;  %v2634_v10 = vld [vmem:[%s2725_s3 + $0x3] ss:$0 sm:$0xff] }
 0x514   :  { %v971_v20 = vmul.f32 %v2562_v28, %v963_v14  ;;  %v956_v21 = vsub.f32 2.0, %v948_v17  ;;  %v1358_v28 = vpop.permute.xlu0 %1357 }
 0x515   :  { %v2296_v22 = vpop.eup %2295  ;;  %v957_v23 = vsub.f32 2.0, %v949_v7 }
 0x516   :  { %v2298_v26 = vpop.eup %2297  ;;  %v964_v27 = vmul.f32 %v2292_v44, %v956_v21  ;;  %v950_v29 = vmul.f32 %v2296_v22, %v930_v11  ;;  %2132 = vmatmul.mubr.msk.f32.vlgmr.msra.gmra.mrb[8].mxu0 %vm258_vm2, %v971_v20 }
 0x517   :  { %v965_v30 = vmul.f32 %v2294_v12, %v957_v23  ;;  %v951_v31 = vmul.f32 %v2298_v26, %v933_v39  ;;  %2140 = vmatpush3.msra.mxu0 %v1282_v59  ;;  %2141 = vmatprep.mubr.msk.f32.mxu0 %vm2334_vm1, %v2332_v38 }
 0x518   :  { %v972_v32 = vmul.f32 %v2567_v46, %v964_v27  ;;  %v958_v33 = vsub.f32 2.0, %v950_v29  ;;  %2149 = vmatprep.subr.mxu0 %v2332_v38  ;;  %v1510_v52 = vpop.permute.xlu0 %1509 }
 0x519   :  { %v2300_v15 = vpop.eup %2299  ;;  %v973_v16 = vmul.f32 %v2569_v47, %v965_v30  ;;  %v959_v18 = vsub.f32 2.0, %v951_v31 }
 0x51a   :  { %v966_v19 = vmul.f32 %v2296_v22, %v958_v33  ;;  %v952_v34 = vmul.f32 %v2300_v15, %v936_v42  ;;  %2137 = vmatmul.mubr.msk.f32.vlgmr.msra.gmra.mrb[14].mxu1 %vm258_vm2, %v972_v32 }
 0x51b   :  { %v967_v35 = vmul.f32 %v2298_v26, %v959_v18  ;;  %2142 = vmatmul.mubr.msk.f32.vlgmr.msra.gmra.mrb[10].mxu0 %vm258_vm2, %v973_v16  ;;  %2145 = vmatpush3.msra.mxu1 %v1358_v28 }
 0x51c   :  { %v974_v46 = vmul.f32 %v2575_v50, %v966_v19  ;;  %v960_v48 = vsub.f32 2.0, %v952_v34  ;;  %2150 = vmatpush3.msra.mxu0 %v1434_v37  ;;  %2146 = vmatprep.mubr.msk.f32.mxu1 %vm2334_vm1, %v2332_v38  ;;  %v2261_v56 = vpop.permute.xlu0 %2260 }
 0x51d   :  { %v975_v47 = vmul.f32 %v2577_v51, %v967_v35  ;;  %2151 = vmatprep.mubr.msk.f32.mxu0 %vm2334_vm1, %v2332_v38  ;;  %2154 = vmatprep.subr.mxu1 %v2332_v38  ;;  %v2256_v51 = vpop.permute.xlu1 %2255  ;;  %v2263_v58 = vunpack.i.h.bf16 %v2261_v56  ;;  %v2262_v59 = vunpack.i.l.bf16 %v2261_v56  ;;  %v1770_v56 = vld [vmem:[%s2723_s1 + $0x38] sm:$0xff] }
 0x51e   :  { %v968_v49 = vmul.f32 %v2300_v15, %v960_v48  ;;  %2147 = vmatmul.mubr.msk.f32.vlgmr.msra.gmra.mrb[16].mxu1 %vm258_vm2, %v974_v46  ;;  %v2258_v53 = vunpack.i.h.bf16 %v2256_v51  ;;  %v2257_v55 = vunpack.i.l.bf16 %v2256_v51  ;;  %v1769_v51 = vld [vmem:[%s2723_s1 + $0x28] sm:$0xff] }
 0x51f   :  { %2152 = vmatmul.mubr.msk.f32.vlgmr.msra.gmra.mrb[12].mxu0 %vm258_vm2, %v975_v47  ;;  %2155 = vmatpush3.msra.mxu1 %v1510_v52  ;;  %v2212_v62 = vpack.c.bf16 %v2263_v58, %v2262_v59  ;;  %v1767_v52 = vld [vmem:[%s2723_s1 + $0x8] sm:$0xff] }
 0x520   :  { %v976_v50 = vmul.f32 %v2583_v54, %v968_v49  ;;  %2156 = vmatprep.mubr.msk.f32.mxu1 %vm2334_vm1, %v2332_v38  ;;  %v2208_v61 = vpack.c.bf16 %v2258_v53, %v2257_v55 }
 0x522   :  { %2157 = vmatmul.mubr.msk.f32.vlgmr.msra.gmra.mrb[18].mxu1 %vm258_vm2, %v976_v50  ;;  %2209 = vmatprep.subr.bf16.mxu0 %v2208_v61  ;;  %v1768_v50 = vld [vmem:[%s2723_s1 + $0x18] sm:$0xff] }
 0x523   :  { %2211 = vmatpush3.bf16.msra.mxu0 %v2208_v61  ;;  %v2216_v55 = vpack.c.bf16 %v1768_v50, %v1767_v52  ;;  %v1863_v61 = vld [vmem:[%s2724_s2 + $0x8] sm:$0xff] }
 0x524   :  { %2213 = vmatprep.subr.bf16.mxu0 %v2212_v62 }
 0x525   :  { %2217 = vmatprep.subr.bf16.mxu1 %v2216_v55 }
 0x526   :  { %2219 = vmatpush3.bf16.msra.mxu1 %v2216_v55 }
 0x527   :  { %2215 = vmatpush3.bf16.msra.mxu0 %v2212_v62  ;;  %v1864_v62 = vld [vmem:[%s2724_s2 + $0x10] sm:$0xff] }
 0x58c   :  { %v1125_v57 = vpop.f32.mrb[12].mxu1 }
 0x58d   :  { %v2128_v60 = vpop.f32.mrb[13].mxu1 }
 0x58e   :  { %v1862_v60 = vld [vmem:[%s2724_s2] sm:$0xff] }
 0x594   :  { %v1049_v2 = vpop.f32.mrb[6].mxu0 }
 0x595   :  { %v2123_v54 = vpop.f32.mrb[7].mxu0 }
 0x596   :  { %v1865_v54 = vld [vmem:[%s2724_s2 + $0x18] sm:$0xff] }
 0x5e9   :  { %v1201_v3 = vpop.f32.mrb[8].mxu0 }
 0x5ea   :  { %1587 = vrot.lane.b32.xlu1 %v1201_v3, %s2338_s12  ;;  %v2133_v38 = vpop.f32.mrb[9].mxu0  ;;  %v2228_v3 = vpack.c.bf16 %v1865_v54, %v1864_v62 }
 0x5eb   :  { %v1866_v38 = vld [vmem:[%s2724_s2 + $0x20] sm:$0xff] }
 0x5ed   :  { %v1277_v5 = vpop.f32.mrb[14].mxu1 }
 0x5ee   :  { %v1353_v45 = vpop.f32.mrb[10].mxu0  ;;  %1589 = vrot.lane.b32.xlu0 %v1277_v5, %s2338_s12  ;;  %v2138_v63 = vpop.f32.mrb[15].mxu1  ;;  %v1867_v5 = vld [vmem:[%s2724_s2 + $0x28] sm:$0xff] }
 0x5ef   :  { %1595 = vrot.lane.b32.xlu1 %v1353_v45, %s2339_s13  ;;  %v2143_v41 = vpop.f32.mrb[11].mxu0 }
 0x5f0   :  { %v2232_v41 = vpack.c.bf16 %v1867_v5, %v1866_v38 }
 0x5f1   :  { %v1429_v43 = vpop.f32.mrb[16].mxu1 }
 0x5f2   :  { %v1505_v6 = vpop.f32.mrb[12].mxu0  ;;  %1597 = vrot.lane.b32.xlu0 %v1429_v43, %s2339_s13  ;;  %v2148_v8 = vpop.f32.mrb[17].mxu1 }
 0x5f3   :  { %1603 = vrot.lane.b32.xlu1 %v1505_v6, %s2340_s14  ;;  %v2153_v9 = vpop.f32.mrb[13].mxu0 }
 0x5f5   :  { %v1581_v11 = vpop.f32.mrb[18].mxu1 }
 0x5f6   :  { %1605 = vrot.lane.b32.xlu0 %v1581_v11, %s2340_s14  ;;  %v2158_v39 = vpop.f32.mrb[19].mxu1 }
 0x5f7   :  { %1642 = vrot.lane.b32.xlu1 %v2634_v10, %s2329_s21 }
 0x65c   :  { %v1588_v13 = vpop.permute.xlu1 %1587 }
 0x65d   :  { %v1609_v36 = vsel %vm258_vm2, %v1049_v2, %v1588_v13  ;;  %v2224_v2 = vpack.c.bf16 %v1863_v61, %v1862_v60  ;;  %v1869_v13 = vld [vmem:[%s2724_s2 + $0x38] sm:$0xff] }
 0x65f   :  { %2225 = vmatprep.subr.bf16.mxu0 %v2224_v2 }
 0x660   :  { %v1590_v40 = vpop.permute.xlu0 %1589 }
 0x661   :  { %v1596_v42 = vpop.permute.xlu1 %1595  ;;  %v1610_v7 = vsel %vm258_vm2, %v1125_v57, %v1590_v40  ;;  %v2220_v57 = vpack.c.bf16 %v1770_v56, %v1769_v51 }
 0x662   :  { %v1612_v12 = vsel %vm1611_vm3, %v1609_v36, %v1596_v42  ;;  %v2003_v42 = vld [vmem:[%s2725_s3 + $0x1] ss:$0 sm:$0xff] }
 0x663   :  { %2221 = vmatprep.subr.bf16.mxu1 %v2220_v57 }
 0x664   :  { %v1598_v44 = vpop.permute.xlu0 %1597  ;;  %2223 = vmatpush3.bf16.msra.mxu1 %v2220_v57 }
 0x665   :  { %v1604_v14 = vpop.permute.xlu1 %1603  ;;  %v1613_v20 = vsel %vm1611_vm3, %v1610_v7, %v1598_v44 }
 0x666   :  { %v1615_v17 = vsel %vm1614_vm4, %v1612_v12, %v1604_v14 }
 0x667   :  { %2167 = vmatprep.mubr.msk.f32.mxu0 %vm25_vm0, %v1615_v17 }
 0x668   :  { %v1606_v21 = vpop.permute.xlu0 %1605 }
 0x669   :  { %v1616_v22 = vsel %vm1614_vm4, %v1613_v20, %v1606_v21  ;;  %v1643_v23 = vpop.permute.xlu1 %1642 }
 0x66a   :  { %2168 = vmatmul.mubr.msk.f32.vlgmr.msra.gmra.mrb[14].mxu0 %vm25_vm0, %v1616_v22 }
 0x66b   :  { %2227 = vmatpush3.bf16.msra.mxu0 %v2224_v2 }
 0x66c   :  { %2229 = vmatprep.subr.bf16.mxu0 %v2228_v3 }
 0x66f   :  { %2231 = vmatpush3.bf16.msra.mxu0 %v2228_v3 }
 0x670   :  { %2233 = vmatprep.subr.bf16.mxu0 %v2232_v41 }
 0x673   :  { %2235 = vmatpush3.bf16.msra.mxu0 %v2232_v41 }
 0x73d   :  { %v2169_v24 = vpop.f32.mrb[14].mxu0 }
 0x73e   :  { %v1723_v25 = vadd.f32 %v2169_v24, %v1643_v23  ;;  %v1717_v26 = vpop.f32.mrb[15].mxu0 }
 0x73f   :  { %v1718_v27 = vadd.f32 %v1717_v26, %v1643_v23 }
 0x740   :  { %v2643_v29 = vadd.f32 %v1723_v25, %v2376_v1 }
 0x741   :  { %v2646_v30 = vadd.f32 %v1718_v27, %v2371_v0 }
 0x742   :  { %v1731_v31 = vsel %vm25_vm0, %v2643_v29, 0.0 }
 0x743   :  { %1732 = vadd.xlane.f32.xlu1 %v1731_v31  ;;  %v1728_v32 = vsel %vm25_vm0, %v2646_v30, 0.0 }
 0x744   :  { %1729 = vadd.xlane.f32.xlu0 %v1728_v32 }
 0x7d0   :  { %v1733_v33 = vpop.xlane.xlu1 %1732 }
 0x7d1   :  { %v1735_v28 = vmul.f32 0.03125, %v1733_v33  ;;  %v1730_v15 = vpop.xlane.xlu0 %1729 }
 0x7d2   :  { %v1734_v16 = vmul.f32 0.03125, %v1730_v15 }
 0x7d3   :  { %v1737_v18 = vsub.f32 %v2643_v29, %v1735_v28 }
 0x7d4   :  { %v1736_v1 = vsub.f32 %v2646_v30, %v1734_v16 }
 0x7d5   :  { %v1739_v34 = vmul.f32 %v1737_v18, %v1737_v18 }
 0x7d6   :  { %v1738_v19 = vmul.f32 %v1736_v1, %v1736_v1 }
 0x7d7   :  { %v1743_v35 = vsel %vm25_vm0, %v1739_v34, 0.0 }
 0x7d8   :  { %v1740_v0 = vsel %vm25_vm0, %v1738_v19, 0.0 }
 0x7d9   :  { %1741 = vadd.xlane.f32.xlu0 %v1740_v0 }
 0x7dd   :  { %1744 = vadd.xlane.f32.xlu0 %v1743_v35 }
 0x866   :  { %v1742_v37 = vpop.xlane.xlu0 %1741 }
 0x867   :  { %v1746_v46 = vmul.f32 0.032258064, %v1742_v37 }
 0x869   :  { %2301 = vrsqrt.f32 %v1746_v46 }
 0x86a   :  { %v1745_v48 = vpop.xlane.xlu0 %1744 }
 0x86b   :  { %v1747_v47 = vmul.f32 0.032258064, %v1745_v48 }
 0x86d   :  { %2303 = vrsqrt.f32 %v1747_v47 }
 0x873   :  { %v2302_v49 = vpop.eup %2301 }
 0x874   :  { %v1750_v53 = vmul.f32 %v2302_v49, %v1736_v1 }
 0x876   :  { %1754 = vrot.lane.b32.xlu0 %v1750_v53, %s2336_s10 }
 0x877   :  { %v2304_v58 = vpop.eup %2303 }
 0x878   :  { %v1751_v59 = vmul.f32 %v2304_v58, %v1737_v18 }
 0x87a   :  { %1756 = vrot.lane.b32.xlu1 %v1751_v59, %s2336_s10 }
 0x87e   :  { %1762 = vrot.lane.b32.xlu1 %v2634_v10, %s2336_s10 }
 0x8e8   :  { %v1755_v45 = vpop.permute.xlu0 %1754 }
 0x8e9   :  { %v1760_v43 = vmul.f32 %v2385_v4, %v1755_v45 }
 0x8ec   :  { %v1757_v63 = vpop.permute.xlu1 %1756 }
 0x8ed   :  { %v1761_v6 = vmul.f32 %v2385_v4, %v1757_v63  ;;  %v1868_v4 = vld [vmem:[%s2724_s2 + $0x30] sm:$0xff]  ;;  %s2341_s2 = smov [#allocation2]  }
 0x8ee   :  { %v2236_v40 = vpack.c.bf16 %v1869_v13, %v1868_v4  ;;  %s1961_s16 = sshll.u32 %s2341_s2, 4  ;;  %s1962_s16 = int_to_ptr.vmem [resolvable:$true] %s1961_s16 }
 0x8ef   :  { %s2305_s3 = scalar_lea.vmem %s1962_s16, 256  ;;  %p2310_p1 = scmp.lt.s32.totalorder %s1962_s16, %s1962_s16 }
 0x8f0   :  { %v1763_v8 = vpop.permute.xlu1 %1762  ;;  %2237 = vmatprep.subr.bf16.mxu0 %v2236_v40  ;;  %p2306_p0 = scmp.ne.s32.totalorder %s1962_s16, %s2305_s3  ;;  %p2311_p2 = scmp.lt.s32.totalorder %s2305_s3, %s2305_s3 }
 0x8f1   :  { %v1766_v9 = vadd.f32 %v1763_v8, %v1761_v6  ;;  %v1765_v10 = vadd.f32 %v1763_v8, %v1760_v43  ;;  %2239 = vmatpush3.bf16.msra.mxu0 %v2236_v40 }
 0x8f2   :  { %p2312_p3 = por %p2311_p2, %p2310_p1 }
 0x8f3   :  { %1779 = vrot.lane.b32.xlu0 %v1766_v9, %s2336_s10  ;;  %1777 = vrot.lane.b32.xlu1 %v1765_v10, %s2336_s10 }
 0x8f4   :  { %p2313_p4 = pnand %p2312_p3, %p2306_p0 }
 0x965   :  { %v1778_v11 = vpop.permute.xlu1 %1777  ;;  %v1780_v39 = vpop.permute.xlu0 %1779 }
 0x966   :  { %2178 = vmatprep.mubr.msk.f32.mxu1 %vm25_vm0, %v1778_v11 }
 0x967   :  { %2179 = vmatmul.mubr.msk.f32.vlgmr.msra.gmra.mrb[20].mxu1 %vm25_vm0, %v1780_v39 }
 0xa3a   :  { %v2180_v36 = vpop.f32.mrb[20].mxu1 }
 0xa3b   :  { %v1857_v44 = vadd.f32 %v2180_v36, %v2003_v42  ;;  %v1851_v12 = vpop.f32.mrb[21].mxu1 }
 0xa3c   :  { %v1852_v14 = vadd.f32 %v2003_v42, %v1851_v12 }
 0xa3d   :  { %v1861_v7 = vmax.f32 %v1857_v44, 0.0 }
 0xa3e   :  { %v1860_v17 = vmax.f32 %v1852_v14, 0.0 }
 0xa40   :  { %2197 = vmatprep.mubr.msk.f32.mxu0 %vm1870_vm5, %v1860_v17 }
 0xa41   :  { %2198 = vmatmul.mubr.msk.f32.vlgmr.msra.gmra.mrb[16].mxu0 %vm1870_vm5, %v1861_v7 }
 0xb14   :  { %v2199_v20 = vpop.f32.mrb[16].mxu0 }
 0xb15   :  { %v1949_v21 = vadd.f32 %v2199_v20, %v1763_v8  ;;  %v1943_v22 = vpop.f32.mrb[17].mxu0 }
 0xb16   :  { %v1944_v23 = vadd.f32 %v1943_v22, %v1763_v8 }
 0xb17   :  { %v1953_v24 = vadd.f32 %v1949_v21, %v2643_v29 }
 0xb18   :  { %v1952_v25 = vadd.f32 %v1944_v23, %v2646_v30 }
 0xb19   :  { %1955 = vst.msk [vmem:[#allocation2 + $0x8] sm:$0xff] %vm25_vm0, %v1953_v24 }
 0xb1a   :  { %1954 = vst.msk [vmem:[#allocation2] sm:$0xff] %vm25_vm0, %v1952_v25 }
 0xb1b   :  { %2316 = shalt.err (!%p2313_p4)
}
 0xb1c   :  { %s2317_s19 = scalar_lea.hbm %s2726_s4, 256 }
 0xb1d   :  { %p2318_p5 = scmp.ne.s32.totalorder %s2726_s4, %s2317_s19  ;;  %p2321_p6 = scmp.lt.u32.totalorder %s2317_s19, %s2726_s4 }
 0xb1f   :  { %p2323_p7 = pnand %p2321_p6, %p2318_p5 }
 0xb21   :  { %2326 = shalt.err (!%p2323_p7)
}
 0xb22   :  { %s2342_s23 = smov 128  }
 0xb23   :  { %1967 = dma.vmem_to_hbm [thread:$0]  %s1962_s16, 256, %s2726_s4, [#allocation3], %s2342_s23, %s2342_s23, %s2338_s12  }
 0xb24   :  { %2327 = dma.done.wait [#allocation3], 256  }
 0xb25   :  { %2328 = vsyncadd [#allocation3], 4294967040 }
 0xb26   :  { %1971 = vsyncpa [#allocation3], 1 }

</bundles_post_ra>
